<compile_context>
chip_gen: v6e
topology: v6e:2x2x1
jax: 0.10.0
libtpu: 0.0.40
codegen_flags: <defaults>
</compile_context>

<pallas_src>
import functools

import jax
import jax.numpy as jnp
from jax.experimental import pallas as pl
from jax.experimental.pallas import tpu as pltpu


def _round_up(a, m):
    return -(-a // m) * m


def _newscnn_kernel(x_ref, w_ref, bconv_ref, mask_ref, wfc_ref, bfc_ref, o_ref,
                    *, kmax, lr_pad):
    """One batch tile: fused 3-branch conv (kmax shifted MXU matmuls) ->
    bias + ReLU -> masked time max-pool -> FC -> softmax."""
    tb, _, c_pad = x_ref.shape
    nf_pad = w_ref.shape[2]

    # On-chip "im2col": accumulate kmax shifted matmuls in f32 on the MXU.
    # x stays a single (tb, Lt, C) bf16 tile in VMEM -- no kmax-inflated
    # im2col operand ever touches HBM.
    acc = jnp.zeros((tb * lr_pad, nf_pad), jnp.float32)
    for t in range(kmax):                                  # tiny static unroll
        xt = x_ref[:, t:t + lr_pad, :].reshape(tb * lr_pad, c_pad)
        acc = acc + jnp.dot(xt, w_ref[t], preferred_element_type=jnp.float32)

    h = jnp.maximum(acc + bconv_ref[...], 0.0)             # conv bias + ReLU (f32)
    h = h.reshape(tb, lr_pad, nf_pad)                      # lr_pad % 16 == 0 -> free view

    # Per-branch valid-length mask (precomputed, resident).  Post-ReLU values
    # are >= 0 so zeroing the invalid tail rows keeps the time max-pool exact.
    pooled = jnp.max(h * mask_ref[...], axis=1)            # (tb, nf_pad)

    # FC (tiny, kept f32) + softmax.  nn.Dropout is eval-mode identity.
    logits = jnp.dot(pooled, wfc_ref[...], preferred_element_type=jnp.float32)
    logits = logits + bfc_ref[...]                         # padded classes carry -1e30
    m = jnp.max(logits, axis=1, keepdims=True)
    e = jnp.exp(logits - m)
    denom = jnp.sum(e, axis=1, keepdims=True)
    o_ref[...] = (e * pl.reciprocal(denom, approx=True)).astype(o_ref.dtype)


def _vmem_capacity_bytes():
    try:
        cap = getattr(pltpu.get_tpu_info(), "vmem_capacity_bytes", None)
        if cap:
            return int(cap)
    except Exception:
        pass
    return 64 * 1024 * 1024            # conservative fallback (v7x per-TC VMEM)


def _choose_tb(batch, lt_pad, lr_pad, c_pad, nf_pad, o_pad, kmax, vmem_budget):
    """Batch tile from a VMEM budget (double-buffered input/output + f32
    intermediates + resident weights), rounded to a sublane multiple."""
    per_row = (2 * lt_pad * c_pad * 2          # double-buffered bf16 input tile
               + lr_pad * nf_pad * 4           # f32 conv/ReLU intermediate
               + 2 * lr_pad * c_pad * 2        # live shifted bf16 slice copies
               + 2 * o_pad * 4)                # double-buffered f32 output tile
    resident = 2 * (kmax * c_pad * nf_pad * 2  # fused per-tap conv weights (bf16)
                    + lr_pad * nf_pad * 4      # valid-length mask
                    + nf_pad * o_pad * 4       # fc weight
                    + (nf_pad + o_pad) * 4)    # biases
    avail = max(vmem_budget - resident, per_row * 8)
    tb = max(8, min(512, (avail // per_row) // 8 * 8))
    if batch >= 32:
        # keep >= ~4 grid steps so the "parallel" batch axis can shard across
        # both TensorCores on v7x (single-TC v5e/v6e: just pipelining).
        tb = min(tb, max(8, _round_up(-(-batch // 4), 8)))
    if tb >= batch:
        return batch                           # whole (small) batch in one block
    return tb


def newscnn_forward(x_ncw, w0, b0, w1, b1, w2, b2, wfc, bfc):
    """NewsCnnModel.forward.

    Args (PyTorch layouts):
      x_ncw: (B, C_in, L)
      w_i:   (F, C_in, k_i) conv weights; b_i: (F,) conv biases
      wfc:   (O, 3F) linear weight; bfc: (O,) linear bias
    Returns: (B, O) softmax probabilities.
    """
    f32, bf16 = jnp.float32, jnp.bfloat16
    B, C, L = x_ncw.shape
    ks = (w0.shape[-1], w1.shape[-1], w2.shape[-1])
    kmax, kmin = max(ks), min(ks)
    F = w0.shape[0]
    O = wfc.shape[0]
    louts = [L - k + 1 for k in ks]            # valid conv rows per branch
    lr = L - kmin + 1                          # widest branch L_out

    # ---- hardware-friendly padded dims (done once in the wrapper) ----
    c_pad = _round_up(C, 128)                  # contraction lanes
    nf_pad = _round_up(3 * F, 128)             # fused conv output columns
    o_pad = _round_up(O, 128)                  # lane-dense class dim
    lr_pad = _round_up(lr, 16)                 # bf16 sublane multiple -> free reshapes
    lt_pad = _round_up(lr_pad + kmax - 1, 16)  # room for every shifted tap slice

    # ---- layout plumbing: NCW -> (B, Lt_pad, C_pad) bf16, zero-padded ----
    x_blc = jnp.transpose(x_ncw, (0, 2, 1)).astype(f32)
    x_p = jnp.pad(x_blc, ((0, 0), (0, lt_pad - L), (0, c_pad - C))).astype(bf16)

    # Fused per-tap conv weights: (kmax, C_pad, 3F_pad); branch j occupies
    # columns [j*F, (j+1)*F), taps beyond its kernel size stay zero.
    w_tap = jnp.zeros((kmax, c_pad, nf_pad), f32)
    for j, w in enumerate((w0, w1, w2)):
        k = w.shape[-1]
        wt = jnp.transpose(w, (2, 1, 0)).astype(f32)       # (k, C, F)
        w_tap = w_tap.at[:k, :C, j * F:(j + 1) * F].set(wt)
    w_tap = w_tap.astype(bf16)

    b_conv = jnp.zeros((1, nf_pad), f32)
    for j, b in enumerate((b0, b1, b2)):
        b_conv = b_conv.at[0, j * F:(j + 1) * F].set(b.astype(f32))

    # Per-branch valid-length mask (resident, 0/1): row t of branch j is valid
    # iff t < L - k_j + 1; padded columns get 0.
    thr = jnp.zeros((nf_pad,), jnp.int32)
    for j, lo in enumerate(louts):
        thr = thr.at[j * F:(j + 1) * F].set(lo)
    mask = (jnp.arange(lr_pad)[:, None] < thr[None, :]).astype(f32)

    # FC weight/bias padded to lane-dense class dim; padded classes get a huge
    # negative bias so their softmax contribution is exactly 0.
    wfc_p = jnp.zeros((nf_pad, o_pad), f32).at[:3 * F, :O].set(wfc.T.astype(f32))
    bfc_p = jnp.full((1, o_pad), -1e30, f32).at[0, :O].set(bfc.astype(f32))

    # ---- generation-aware batch tiling ----
    vmem_cap = _vmem_capacity_bytes()
    vmem_limit = int(min(vmem_cap * 0.75, 96 * 1024 * 1024))
    tb = _choose_tb(B, lt_pad, lr_pad, c_pad, nf_pad, o_pad, kmax,
                    int(vmem_limit * 0.85))
    grid = (pl.cdiv(B, tb),)

    kernel = functools.partial(_newscnn_kernel, kmax=kmax, lr_pad=lr_pad)
    out = pl.pallas_call(
        kernel,
        out_shape=jax.ShapeDtypeStruct((B, o_pad), f32),
        grid=grid,
        in_specs=[
            pl.BlockSpec((tb, lt_pad, c_pad), lambda i: (i, 0, 0)),   # activations (batch-tiled)
            pl.BlockSpec((kmax, c_pad, nf_pad), lambda i: (0, 0, 0)), # fused conv weights (resident)
            pl.BlockSpec((1, nf_pad), lambda i: (0, 0)),              # conv bias (resident)
            pl.BlockSpec((lr_pad, nf_pad), lambda i: (0, 0)),         # valid-length mask (resident)
            pl.BlockSpec((nf_pad, o_pad), lambda i: (0, 0)),          # fc weight (resident)
            pl.BlockSpec((1, o_pad), lambda i: (0, 0)),               # fc bias (resident)
        ],
        out_specs=pl.BlockSpec((tb, o_pad), lambda i: (i, 0)),        # lane-dense output
        compiler_params=pltpu.CompilerParams(
            dimension_semantics=("parallel",),
            vmem_limit_bytes=vmem_limit,
        ),
    )(x_p, w_tap, b_conv, mask, wfc_p, bfc_p)

    return out[:, :O]


def reference_forward(x_ncw, w0, b0, w1, b1, w2, b2, wfc, bfc):
    """Pure-JAX reference matching the PyTorch forward (for sanity check)."""
    def branch(w, b):
        out = jax.lax.conv_general_dilated(
            x_ncw, w, window_strides=(1,), padding="VALID",
            dimension_numbers=("NCH", "OIH", "NCH"))              # (B, F, L_out)
        out = jnp.maximum(out + b[None, :, None], 0.0)
        return jnp.max(out, axis=2)                               # time max-pool -> (B, F)

    cat = jnp.concatenate([branch(w0, b0), branch(w1, b1), branch(w2, b2)], axis=1)
    logits = cat @ wfc.T + bfc
    return jax.nn.softmax(logits, axis=1)


if __name__ == "__main__":
    # Small shapes consistent with the module's forward (Conv1d over NCW input).
    B, C_in, L = 2, 16, 16
    F = 32                       # n_filters
    filter_sizes = [3, 4, 5]
    O = 3                        # output_size

    key = jax.random.PRNGKey(0)
    keys = jax.random.split(key, 9)
    x = jax.random.normal(keys[0], (B, C_in, L), dtype=jnp.float32)  # PyTorch NCW layout

    def conv_params(kw, kb, k):
        w = 0.1 * jax.random.normal(kw, (F, C_in, k), dtype=jnp.float32)
        b = 0.1 * jax.random.normal(kb, (F,), dtype=jnp.float32)
        return w, b

    w0, b0 = conv_params(keys[1], keys[2], filter_sizes[0])
    w1, b1 = conv_params(keys[3], keys[4], filter_sizes[1])
    w2, b2 = conv_params(keys[5], keys[6], filter_sizes[2])
    wfc = 0.1 * jax.random.normal(keys[7], (O, 3 * F), dtype=jnp.float32)
    bfc = 0.1 * jax.random.normal(keys[8], (O,), dtype=jnp.float32)

    out = jax.block_until_ready(newscnn_forward(x, w0, b0, w1, b1, w2, b2, wfc, bfc))
    ref = reference_forward(x, w0, b0, w1, b1, w2, b2, wfc, bfc)

    assert out.shape == (B, O)
    # approx reciprocal (EUP) in the softmax -> rows sum to 1 within ~1e-3.
    assert jnp.allclose(jnp.sum(out, axis=1), 1.0, atol=3e-3)
    # bf16 conv operands (f32 accumulation) + approx reciprocal -> modest tolerance.
    assert jnp.allclose(out, ref, atol=1e-2, rtol=1e-2)
    print("KERNEL_OK")
</pallas_src>

<mosaic_0001>
module attributes {stable_mosaic.version = 11 : i64} {
  func.func @_newscnn_kernel(%arg0: i32, %arg1: memref<2x32x128xbf16, #tpu.memory_space<vmem>>, %arg2: memref<5x128x128xbf16, #tpu.memory_space<vmem>>, %arg3: memref<1x128xf32, #tpu.memory_space<vmem>>, %arg4: memref<16x128xf32, #tpu.memory_space<vmem>>, %arg5: memref<128x128xf32, #tpu.memory_space<vmem>>, %arg6: memref<1x128xf32, #tpu.memory_space<vmem>>, %arg7: memref<2x128xf32, #tpu.memory_space<vmem>>) attributes {dimension_semantics = [#tpu.dimension_semantics<parallel>], iteration_bounds = array<i64: 1>, scalar_prefetch = 0 : i64, scratch_operands = 0 : i64, tpu.core_type = #tpu.core_type<tc>, window_params = [{transform_indices = @transform_0, window_bounds = array<i64: 2, 32, 128>}, {pipeline_mode = #tpu.pipeline_mode<synchronous>, transform_indices = @transform_1, window_bounds = array<i64: 5, 128, 128>}, {pipeline_mode = #tpu.pipeline_mode<synchronous>, transform_indices = @transform_2, window_bounds = array<i64: 1, 128>}, {pipeline_mode = #tpu.pipeline_mode<synchronous>, transform_indices = @transform_3, window_bounds = array<i64: 16, 128>}, {pipeline_mode = #tpu.pipeline_mode<synchronous>, transform_indices = @transform_4, window_bounds = array<i64: 128, 128>}, {pipeline_mode = #tpu.pipeline_mode<synchronous>, transform_indices = @transform_5, window_bounds = array<i64: 1, 128>}, {transform_indices = @transform_6, window_bounds = array<i64: 2, 128>}]} {
    %cst = arith.constant 0.000000e+00 : f32
    %0 = vector.broadcast %cst : f32 to vector<32x128xf32>
    %c0 = arith.constant 0 : index
    %c0_0 = arith.constant 0 : index
    %c0_1 = arith.constant 0 : index
    %1 = vector.load %arg1[%c0, %c0_0, %c0_1] : memref<2x32x128xbf16, #tpu.memory_space<vmem>>, vector<2x16x128xbf16>
    %2 = vector.shape_cast %1 : vector<2x16x128xbf16> to vector<32x128xbf16>
    %c0_2 = arith.constant 0 : index
    %c0_3 = arith.constant 0 : index
    %c0_4 = arith.constant 0 : index
    %3 = vector.load %arg2[%c0_2, %c0_3, %c0_4] : memref<5x128x128xbf16, #tpu.memory_space<vmem>>, vector<1x128x128xbf16>
    %4 = vector.shape_cast %3 : vector<1x128x128xbf16> to vector<128x128xbf16>
    %cst_5 = arith.constant dense<0.000000e+00> : vector<32x128xf32>
    %5 = tpu.matmul %2, %4, %cst_5 {dimension_numbers = #tpu.dot_dimension_numbers<[1], [0], [0], [1], [0, 0, 1, 1], [], []>} : vector<32x128xbf16>, vector<128x128xbf16>, vector<32x128xf32> -> vector<32x128xf32>
    %6 = arith.addf %0, %5 : vector<32x128xf32>
    %c0_6 = arith.constant 0 : index
    %c1 = arith.constant 1 : index
    %c0_7 = arith.constant 0 : index
    %7 = vector.load %arg1[%c0_6, %c1, %c0_7] : memref<2x32x128xbf16, #tpu.memory_space<vmem>>, vector<2x16x128xbf16>
    %8 = vector.shape_cast %7 : vector<2x16x128xbf16> to vector<32x128xbf16>
    %c1_8 = arith.constant 1 : index
    %c0_9 = arith.constant 0 : index
    %c0_10 = arith.constant 0 : index
    %9 = vector.load %arg2[%c1_8, %c0_9, %c0_10] : memref<5x128x128xbf16, #tpu.memory_space<vmem>>, vector<1x128x128xbf16>
    %10 = vector.shape_cast %9 : vector<1x128x128xbf16> to vector<128x128xbf16>
    %cst_11 = arith.constant dense<0.000000e+00> : vector<32x128xf32>
    %11 = tpu.matmul %8, %10, %cst_11 {dimension_numbers = #tpu.dot_dimension_numbers<[1], [0], [0], [1], [0, 0, 1, 1], [], []>} : vector<32x128xbf16>, vector<128x128xbf16>, vector<32x128xf32> -> vector<32x128xf32>
    %12 = arith.addf %6, %11 : vector<32x128xf32>
    %c0_12 = arith.constant 0 : index
    %c2 = arith.constant 2 : index
    %c0_13 = arith.constant 0 : index
    %13 = vector.load %arg1[%c0_12, %c2, %c0_13] : memref<2x32x128xbf16, #tpu.memory_space<vmem>>, vector<2x16x128xbf16>
    %14 = vector.shape_cast %13 : vector<2x16x128xbf16> to vector<32x128xbf16>
    %c2_14 = arith.constant 2 : index
    %c0_15 = arith.constant 0 : index
    %c0_16 = arith.constant 0 : index
    %15 = vector.load %arg2[%c2_14, %c0_15, %c0_16] : memref<5x128x128xbf16, #tpu.memory_space<vmem>>, vector<1x128x128xbf16>
    %16 = vector.shape_cast %15 : vector<1x128x128xbf16> to vector<128x128xbf16>
    %cst_17 = arith.constant dense<0.000000e+00> : vector<32x128xf32>
    %17 = tpu.matmul %14, %16, %cst_17 {dimension_numbers = #tpu.dot_dimension_numbers<[1], [0], [0], [1], [0, 0, 1, 1], [], []>} : vector<32x128xbf16>, vector<128x128xbf16>, vector<32x128xf32> -> vector<32x128xf32>
    %18 = arith.addf %12, %17 : vector<32x128xf32>
    %c0_18 = arith.constant 0 : index
    %c3 = arith.constant 3 : index
    %c0_19 = arith.constant 0 : index
    %19 = vector.load %arg1[%c0_18, %c3, %c0_19] : memref<2x32x128xbf16, #tpu.memory_space<vmem>>, vector<2x16x128xbf16>
    %20 = vector.shape_cast %19 : vector<2x16x128xbf16> to vector<32x128xbf16>
    %c3_20 = arith.constant 3 : index
    %c0_21 = arith.constant 0 : index
    %c0_22 = arith.constant 0 : index
    %21 = vector.load %arg2[%c3_20, %c0_21, %c0_22] : memref<5x128x128xbf16, #tpu.memory_space<vmem>>, vector<1x128x128xbf16>
    %22 = vector.shape_cast %21 : vector<1x128x128xbf16> to vector<128x128xbf16>
    %cst_23 = arith.constant dense<0.000000e+00> : vector<32x128xf32>
    %23 = tpu.matmul %20, %22, %cst_23 {dimension_numbers = #tpu.dot_dimension_numbers<[1], [0], [0], [1], [0, 0, 1, 1], [], []>} : vector<32x128xbf16>, vector<128x128xbf16>, vector<32x128xf32> -> vector<32x128xf32>
    %24 = arith.addf %18, %23 : vector<32x128xf32>
    %c0_24 = arith.constant 0 : index
    %c4 = arith.constant 4 : index
    %c0_25 = arith.constant 0 : index
    %25 = vector.load %arg1[%c0_24, %c4, %c0_25] : memref<2x32x128xbf16, #tpu.memory_space<vmem>>, vector<2x16x128xbf16>
    %26 = vector.shape_cast %25 : vector<2x16x128xbf16> to vector<32x128xbf16>
    %c4_26 = arith.constant 4 : index
    %c0_27 = arith.constant 0 : index
    %c0_28 = arith.constant 0 : index
    %27 = vector.load %arg2[%c4_26, %c0_27, %c0_28] : memref<5x128x128xbf16, #tpu.memory_space<vmem>>, vector<1x128x128xbf16>
    %28 = vector.shape_cast %27 : vector<1x128x128xbf16> to vector<128x128xbf16>
    %cst_29 = arith.constant dense<0.000000e+00> : vector<32x128xf32>
    %29 = tpu.matmul %26, %28, %cst_29 {dimension_numbers = #tpu.dot_dimension_numbers<[1], [0], [0], [1], [0, 0, 1, 1], [], []>} : vector<32x128xbf16>, vector<128x128xbf16>, vector<32x128xf32> -> vector<32x128xf32>
    %30 = arith.addf %24, %29 : vector<32x128xf32>
    %c0_30 = arith.constant 0 : index
    %c0_31 = arith.constant 0 : index
    %31 = vector.load %arg3[%c0_30, %c0_31] : memref<1x128xf32, #tpu.memory_space<vmem>>, vector<1x128xf32>
    %32 = vector.broadcast %31 : vector<1x128xf32> to vector<32x128xf32>
    %33 = arith.addf %30, %32 : vector<32x128xf32>
    %cst_32 = arith.constant 0.000000e+00 : f32
    %34 = vector.broadcast %cst_32 : f32 to vector<32x128xf32>
    %35 = arith.maximumf %33, %34 : vector<32x128xf32>
    %36 = vector.shape_cast %35 : vector<32x128xf32> to vector<2x16x128xf32>
    %c0_33 = arith.constant 0 : index
    %c0_34 = arith.constant 0 : index
    %37 = vector.load %arg4[%c0_33, %c0_34] : memref<16x128xf32, #tpu.memory_space<vmem>>, vector<16x128xf32>
    %38 = vector.shape_cast %37 : vector<16x128xf32> to vector<1x16x128xf32>
    %39 = vector.broadcast %38 : vector<1x16x128xf32> to vector<2x16x128xf32>
    %40 = arith.mulf %36, %39 : vector<2x16x128xf32>
    %cst_35 = arith.constant dense<0xFF800000> : vector<2x128xf32>
    %41 = vector.multi_reduction <maximumf>, %40, %cst_35 [1] : vector<2x16x128xf32> to vector<2x128xf32>
    %c0_36 = arith.constant 0 : index
    %c0_37 = arith.constant 0 : index
    %42 = vector.load %arg5[%c0_36, %c0_37] : memref<128x128xf32, #tpu.memory_space<vmem>>, vector<128x128xf32>
    %cst_38 = arith.constant dense<0.000000e+00> : vector<2x128xf32>
    %43 = tpu.matmul %41, %42, %cst_38 {dimension_numbers = #tpu.dot_dimension_numbers<[1], [0], [0], [1], [0, 0, 1, 1], [], []>} : vector<2x128xf32>, vector<128x128xf32>, vector<2x128xf32> -> vector<2x128xf32>
    %c0_39 = arith.constant 0 : index
    %c0_40 = arith.constant 0 : index
    %44 = vector.load %arg6[%c0_39, %c0_40] : memref<1x128xf32, #tpu.memory_space<vmem>>, vector<1x128xf32>
    %45 = vector.broadcast %44 : vector<1x128xf32> to vector<2x128xf32>
    %46 = arith.addf %43, %45 : vector<2x128xf32>
    %cst_41 = arith.constant dense<0xFF800000> : vector<2xf32>
    %47 = vector.multi_reduction <maximumf>, %46, %cst_41 [1] : vector<2x128xf32> to vector<2xf32>
    %48 = vector.shape_cast %47 : vector<2xf32> to vector<2x1xf32>
    %49 = vector.broadcast %48 : vector<2x1xf32> to vector<2x128xf32>
    %50 = arith.subf %46, %49 : vector<2x128xf32>
    %51 = math.exp %50 : vector<2x128xf32>
    %cst_42 = arith.constant dense<0.000000e+00> : vector<2xf32>
    %52 = vector.multi_reduction <add>, %51, %cst_42 [1] : vector<2x128xf32> to vector<2xf32>
    %53 = vector.shape_cast %52 : vector<2xf32> to vector<2x1xf32>
    %54 = tpu.reciprocal %53 {approx = true} : vector<2x1xf32> -> vector<2x1xf32>
    %55 = vector.broadcast %54 : vector<2x1xf32> to vector<2x128xf32>
    %56 = arith.mulf %51, %55 : vector<2x128xf32>
    %c0_43 = arith.constant 0 : index
    %c0_44 = arith.constant 0 : index
    %57 = vector.load %arg7[%c0_43, %c0_44] : memref<2x128xf32, #tpu.memory_space<vmem>>, vector<2x128xf32>
    tpu.vector_store %arg7[%c0_43, %c0_44], %56 {strides = array<i32>} : memref<2x128xf32, #tpu.memory_space<vmem>>, vector<2x128xf32>,
    return
  }
  func.func @transform_0(%arg0: i32) -> (i32, i32, i32) {
    %c0_i32 = arith.constant 0 : i32
    %c0_i32_0 = arith.constant 0 : i32
    %c0_i32_1 = arith.constant 0 : i32
    return %arg0, %c0_i32, %c0_i32_0 : i32, i32, i32
  }
  func.func @transform_1(%arg0: i32) -> (i32, i32, i32) {
    %c0_i32 = arith.constant 0 : i32
    %c0_i32_0 = arith.constant 0 : i32
    %c0_i32_1 = arith.constant 0 : i32
    %c0_i32_2 = arith.constant 0 : i32
    return %c0_i32, %c0_i32_0, %c0_i32_1 : i32, i32, i32
  }
  func.func @transform_2(%arg0: i32) -> (i32, i32) {
    %c0_i32 = arith.constant 0 : i32
    %c0_i32_0 = arith.constant 0 : i32
    %c0_i32_1 = arith.constant 0 : i32
    return %c0_i32, %c0_i32_0 : i32, i32
  }
  func.func @transform_3(%arg0: i32) -> (i32, i32) {
    %c0_i32 = arith.constant 0 : i32
    %c0_i32_0 = arith.constant 0 : i32
    %c0_i32_1 = arith.constant 0 : i32
    return %c0_i32, %c0_i32_0 : i32, i32
  }
  func.func @transform_4(%arg0: i32) -> (i32, i32) {
    %c0_i32 = arith.constant 0 : i32
    %c0_i32_0 = arith.constant 0 : i32
    %c0_i32_1 = arith.constant 0 : i32
    return %c0_i32, %c0_i32_0 : i32, i32
  }
  func.func @transform_5(%arg0: i32) -> (i32, i32) {
    %c0_i32 = arith.constant 0 : i32
    %c0_i32_0 = arith.constant 0 : i32
    %c0_i32_1 = arith.constant 0 : i32
    return %c0_i32, %c0_i32_0 : i32, i32
  }
  func.func @transform_6(%arg0: i32) -> (i32, i32) {
    %c0_i32 = arith.constant 0 : i32
    %c0_i32_0 = arith.constant 0 : i32
    return %arg0, %c0_i32 : i32, i32
  }
}

</mosaic_0001>

<bundles_post_ra>
// kernel: tpu_custom_call.1
= control target key start
LH: loop header
LB: loop body
LE: loop exit
PB: predicated region body
PF: predicated region fallthrough
CT: control target
= control target key end

     0   :  { %11 = vsyncpa [#allocation3], 0  ;;  %s1626_s0 = inlined_call_operand.hbm [shape: bf16[2,32,128], index: 0, kind: input, shape index: {}]   ;;  %s1627_s1 = inlined_call_operand.hbm [shape: bf16[5,128,128], index: 1, kind: input, shape index: {}]   ;;  %s1628_s2 = inlined_call_operand.vmem [shape: f32[1,128], index: 2, kind: input, shape index: {}]   ;;  %s1629_s3 = inlined_call_operand.hbm [shape: f32[16,128], index: 3, kind: input, shape index: {}]   ;;  %s1630_s4 = inlined_call_operand.hbm [shape: f32[128,128], index: 4, kind: input, shape index: {}]   ;;  %s1631_s5 = inlined_call_operand.vmem [shape: f32[1,128], index: 5, kind: input, shape index: {}]   ;;  %s1632_s6 = inlined_call_operand.hbm [shape: f32[2,128], index: 6, kind: output, shape index: {}]  }
   0x1   :  { %12 = vsyncpa [#allocation6], 0 }
   0x2   :  { %13 = vsyncpa [#allocation9], 0 }
   0x3   :  { %14 = vsyncpa [#allocation4], 0  ;;  %s1445_s21 = smov [#allocation5]   ;;  %s1446_s23 = smov [#allocation2]  }
   0x4   :  { %s32_s22 = sshll.u32 %s1445_s21, 4  ;;  %s20_s24 = sshll.u32 %s1446_s23, 4  ;;  %s33_s22 = int_to_ptr.vmem [resolvable:$true] %s32_s22  ;;  %s21_s24 = int_to_ptr.vmem [resolvable:$true] %s20_s24 }
   0x5   :  { %s1345_s25 = scalar_lea.vmem %s33_s22, 5120  ;;  %p1350_p1 = scmp.lt.s32.totalorder %s33_s22, %s33_s22 }
   0x6   :  { %p1346_p0 = scmp.ne.s32.totalorder %s33_s22, %s1345_s25  ;;  %p1351_p2 = scmp.lt.s32.totalorder %s1345_s25, %s1345_s25 }
   0x8   :  { %p1352_p3 = por %p1351_p2, %p1350_p1 }
   0xa   :  { %p1353_p4 = pnand %p1352_p3, %p1346_p0 }
   0xc   :  { %1356 = shalt.err (!%p1353_p4)
}
   0xd   :  { %s1447_s26 = smov 64   ;;  %s1448_s27 = smov 4  }
   0xe   :  { %38 = dma.hbm_to_vmem [thread:$0]  %s1627_s1, 5120, %s33_s22, [#allocation6], %s1447_s26, %s1447_s26, %s1448_s27  }
   0xf   :  { %s1365_s30 = scalar_lea.vmem %s21_s24, 512  ;;  %p1370_p6 = scmp.lt.s32.totalorder %s21_s24, %s21_s24 }
  0x10   :  { %p1366_p5 = scmp.ne.s32.totalorder %s21_s24, %s1365_s30  ;;  %p1371_p7 = scmp.lt.s32.totalorder %s1365_s30, %s1365_s30 }
  0x12   :  { %p1372_p8 = por %p1371_p7, %p1370_p6 }
  0x14   :  { %p1373_p9 = pnand %p1372_p8, %p1366_p5 }
  0x16   :  { %1376 = shalt.err (!%p1373_p9)
}
  0x17   :  { %26 = dma.hbm_to_vmem [thread:$0]  %s1626_s0, 512, %s21_s24, [#allocation3], %s1447_s26, %s1447_s26, %s1448_s27  }
  0x18   :  { %s1449_s9 = smov [#allocation7]  }
  0x19   :  { %s46_s10 = sshll.u32 %s1449_s9, 4  ;;  %s47_s10 = int_to_ptr.vmem [resolvable:$true] %s46_s10 }
  0x1a   :  { %s1385_s11 = scalar_lea.vmem %s47_s10, 256  ;;  %p1390_p11 = scmp.lt.s32.totalorder %s47_s10, %s47_s10 }
  0x1b   :  { %p1386_p10 = scmp.ne.s32.totalorder %s47_s10, %s1385_s11  ;;  %p1391_p12 = scmp.lt.s32.totalorder %s1385_s11, %s1385_s11 }
  0x1d   :  { %p1392_p13 = por %p1391_p12, %p1390_p11 }
  0x1f   :  { %p1393_p0 = pnand %p1392_p13, %p1386_p10 }
  0x21   :  { %1396 = shalt.err (!%p1393_p0)
}
  0x22   :  { %s1450_s1 = smov 128   ;;  %s1451_s12 = smov 8  }
  0x23   :  { %52 = dma.hbm_to_vmem [thread:$0]  %s1629_s3, 256, %s47_s10, [#allocation6], %s1450_s1, %s1450_s1, %s1451_s12  }
  0x24   :  { %s1452_s15 = smov [#allocation8]  }
  0x25   :  { %s58_s16 = sshll.u32 %s1452_s15, 4  ;;  %s59_s16 = int_to_ptr.vmem [resolvable:$true] %s58_s16 }
  0x26   :  { %s1405_s0 = scalar_lea.vmem %s59_s16, 2048  ;;  %p1410_p2 = scmp.lt.s32.totalorder %s59_s16, %s59_s16 }
  0x27   :  { %p1406_p1 = scmp.ne.s32.totalorder %s59_s16, %s1405_s0  ;;  %p1411_p3 = scmp.lt.s32.totalorder %s1405_s0, %s1405_s0 }
  0x29   :  { %p1412_p4 = por %p1411_p3, %p1410_p2 }
  0x2b   :  { %p1413_p5 = pnand %p1412_p4, %p1406_p1 }
  0x2d   :  { %1416 = shalt.err (!%p1413_p5)
}
  0x2e   :  { %64 = dma.hbm_to_vmem [thread:$0]  %s1630_s4, 2048, %s59_s16, [#allocation9], %s1450_s1, %s1450_s1, %s1451_s12  }
  0x2f   :  { %1437 = dma.done.wait [#allocation3], 512  }
  0x30   :  { %1438 = vsyncadd [#allocation3], 4294966784 }
  0x31   :  { %1439 = dma.done.wait [#allocation6], 5376  }
  0x32   :  { %1440 = vsyncadd [#allocation6], 4294961920 }
  0x33   :  { %1441 = dma.done.wait [#allocation9], 2048  }
  0x34   :  { %1442 = vsyncadd [#allocation9], 4294965248  ;;  %v1291_v0 = vld [vmem:[#allocation5 + $0x78] sm:$0xff]   ;;  %v1293_v2 = vld [vmem:[#allocation5 + $0x70] sm:$0xff]   ;;  %vm102_vm0 = vsmask.f32 3328 }
  0x35   :  { %v1292_v1 = vld [vmem:[#allocation5 + $0x38] sm:$0xff]   ;;  %1145 = vmatprep.subr.bf16.mxu0 %v1291_v0  ;;  %v1294_v3 = vld [vmem:[#allocation5 + $0x30] sm:$0xff]   ;;  %v1295_v4 = vld [vmem:[#allocation5 + $0x68] sm:$0xff]   ;;  %vm103_vm1 = vsmask.f32 7440  ;;  %vm390_vm3 = vcmask 1042432  }
  0x36   :  { %1165 = vmatprep.subr.bf16.mxu1 %v1292_v1  ;;  %1146 = vmatpush3.bf16.msra.mxu0 %v1291_v0  ;;  %v1296_v5 = vld [vmem:[#allocation5 + $0x28] sm:$0xff]   ;;  %v1297_v6 = vld [vmem:[#allocation5 + $0x60] sm:$0xff]   ;;  %v1299_v8 = vld [vmem:[#allocation5 + $0x58] sm:$0xff]   ;;  %vm391_vm4 = vcmask 1046532   ;;  %vm535_vm5 = vsmask.f32 2304 }
  0x37   :  { %1166 = vmatpush3.bf16.msra.mxu1 %v1292_v1  ;;  %1147 = vmatprep.subr.bf16.mxu0 %v1293_v2  ;;  %v1298_v7 = vld [vmem:[#allocation5 + $0x20] sm:$0xff]   ;;  %v1300_v9 = vld [vmem:[#allocation5 + $0x18] sm:$0xff]   ;;  %v1301_v10 = vld [vmem:[#allocation5 + $0x50] sm:$0xff]   ;;  %vm536_vm7 = vsmask.f32 6416  ;;  %vm716_vm9 = vcmask 1041408  }
  0x38   :  { %1167 = vmatprep.subr.bf16.mxu1 %v1294_v3  ;;  %v1302_v11 = vld [vmem:[#allocation5 + $0x10] sm:$0xff]   ;;  %v80_v12 = vld [vmem:[#allocation2] sm:$0xf]  ;;  %v1503_v13 = vld [vmem:[#allocation2 + $0x4] sm:$0xf]  ;;  %vm717_vm10 = vcmask 1045508  }
  0x39   :  { %v1505_v14 = vld [vmem:[#allocation2 + $0x8] sm:$0x1]  ;;  %v106_v15 = vshrl.u32 %v80_v12, 16  ;;  %v109_v16 = vshll.u32 %v80_v12, 16  ;;  %v115_v17 = vshll.u32 %v1503_v13, 16  ;;  %v119_v18 = vshrl.u32 %v1503_v13, 16  ;;  %vm1527_vm2 = vmor %vm102_vm0, %vm103_vm1 }
  0x3a   :  { %1148 = vmatpush3.bf16.msra.mxu0 %v1293_v2  ;;  %v1509_v19 = vld [vmem:[#allocation2 + $0x10] sm:$0xf]  ;;  %v125_v20 = vshll.u32 %v1505_v14, 16  ;;  %v1032_v21 = vcombine.low %v80_v12, %v1503_v13  ;;  %v1513_v22 = vld [vmem:[#allocation2 + $0x14] sm:$0xf]  ;;  %v1303_v28 = vld [vmem:[#allocation5 + $0x48] sm:$0xff]  }
  0x3b   :  { %1168 = vmatpush3.bf16.msra.mxu1 %v1294_v3  ;;  %1149 = vmatprep.subr.bf16.mxu0 %v1295_v4  ;;  %v1515_v23 = vld [vmem:[#allocation2 + $0x18] sm:$0x1]  ;;  %v108_v24 = vrot.slane %v106_v15, 4  ;;  %v111_v25 = vrot.slane %v109_v16, 5  ;;  %v117_v26 = vrot.slane %v115_v17, 5  ;;  %v121_v27 = vrot.slane %v119_v18, 4  ;;  %vm1553_vm6 = vmor %vm390_vm3, %vm391_vm4 }
  0x3c   :  { %1169 = vmatprep.subr.bf16.mxu1 %v1296_v5  ;;  %v127_v29 = vrot.slane %v125_v20, 5  ;;  %v130_v30 = vshrl.u32 %v1509_v19, 16  ;;  %v133_v31 = vshll.u32 %v1509_v19, 16  ;;  %v1304_v32 = vld [vmem:[#allocation5 + $0x8] sm:$0xff]   ;;  %1181 = vmatprep.mubr.bf16.mxu1 %v1032_v21  ;;  %v139_v35 = vshll.u32 %v1513_v22, 16  ;;  %v1305_v45 = vld [vmem:[#allocation5 + $0x40] sm:$0xff]   ;;  %vm1570_vm8 = vmor %vm535_vm5, %vm536_vm7 }
  0x3d   :  { %v112_v33 = vor.u32 %v111_v25, %v108_v24  ;;  %v122_v34 = vor.u32 %v121_v27, %v117_v26  ;;  %v143_v36 = vshrl.u32 %v1513_v22, 16  ;;  %v149_v40 = vshll.u32 %v1515_v23, 16  ;;  %v1306_v46 = vld [vmem:[#allocation5] sm:$0xff]   ;;  %v1309_v56 = vld [vmem:[#allocation5 + $0xb8] sm:$0xff]   ;;  %v1311_v63 = vld [vmem:[#allocation5 + $0xb0] sm:$0xff]   ;;  %s1455_s20 = smov [#allocation10]  }
  0x3e   :  { %1150 = vmatpush3.bf16.msra.mxu0 %v1295_v4  ;;  %v132_v38 = vrot.slane %v130_v30, 4  ;;  %v135_v39 = vrot.slane %v133_v31, 5  ;;  %v141_v43 = vrot.slane %v139_v35, 5  ;;  %v1310_v58 = vld [vmem:[#allocation5 + $0xf8] sm:$0xff]   ;;  %v395_v60 = vrot.slane %v1503_v13, 5  ;;  %v1312_v1 = vld [vmem:[#allocation5 + $0xf0] sm:$0xff]   ;;  %vm1593_vm11 = vmor %vm716_vm9, %vm717_vm10 }
  0x3f   :  { %1170 = vmatpush3.bf16.msra.mxu1 %v1296_v5  ;;  %1151 = vmatprep.subr.bf16.mxu0 %v1297_v6  ;;  %v113_v41 = vrot.slane %v112_v33, 4  ;;  %v123_v42 = vrot.slane %v122_v34, 4  ;;  %v145_v44 = vrot.slane %v143_v36, 4  ;;  %v151_v48 = vrot.slane %v149_v40, 5  ;;  %v1313_v5 = vld [vmem:[#allocation5 + $0xa8] sm:$0xff]   ;;  %v1315_v15 = vld [vmem:[#allocation5 + $0xa0] sm:$0xff]  }
  0x40   :  { %1171 = vmatprep.subr.bf16.mxu1 %v1298_v7  ;;  %v136_v47 = vor.u32 %v135_v39, %v132_v38  ;;  %v1033_v61 = vcombine.low %v1509_v19, %v1513_v22  ;;  %v398_v62 = vrot.slane %v1505_v14, 5  ;;  %v548_v0 = vrot.slane %v115_v17, 6  ;;  %v1561_v12 = vld [vmem:[#allocation2 + $0x8] sm:$0x3]  ;;  %v1316_v16 = vld [vmem:[#allocation5 + $0xe0] sm:$0xff]   ;;  %v1318_v39 = vld [vmem:[#allocation5 + $0xd8] sm:$0xff]  }
  0x41   :  { %v118_v49 = vsel %vm1527_vm2, %v113_v41, %v117_v26  ;;  %v128_v50 = vsel %vm1527_vm2, %v123_v42, %v127_v29  ;;  %v146_v51 = vor.u32 %v145_v44, %v141_v43  ;;  %v397_v2 = vrot.slane %v395_v60, 4  ;;  %v1574_v31 = vld [vmem:[#allocation2 + $0x18] sm:$0x3]  ;;  %v1319_v42 = vld [vmem:[#allocation5 + $0x90] sm:$0xff]   ;;  %s1011_s21 = sshll.u32 %s1455_s20, 4  ;;  %s1012_s21 = int_to_ptr.vmem [resolvable:$true] %s1011_s21 }
  0x42   :  { %1152 = vmatpush3.bf16.msra.mxu0 %v1297_v6  ;;  %v1022_v52 = vcombine.low %v118_v49, %v128_v50  ;;  %v137_v53 = vrot.slane %v136_v47, 4  ;;  %v547_v3 = vrot.slane %v119_v18, 5  ;;  %v1314_v6 = vld [vmem:[#allocation5 + $0xe8] sm:$0xff]   ;;  %v553_v19 = vshrl.u32 %v1561_v12, 16  ;;  %p1422_p7 = scmp.lt.s32.totalorder %s1012_s21, %s1012_s21 }
  0x43   :  { %1172 = vmatpush3.bf16.msra.mxu1 %v1298_v7  ;;  %1153 = vmatprep.subr.bf16.mxu0 %v1299_v8  ;;  %v147_v54 = vrot.slane %v146_v51, 4  ;;  %v384_v7 = vld [vmem:[#allocation2] sm:$0xe]  ;;  %v556_v20 = vshll.u32 %v1561_v12, 16  ;;  %v571_v38 = vrot.slane %v139_v35, 6  ;;  %v570_v41 = vrot.slane %v143_v36, 5 }
  0x44   :  { %1173 = vmatprep.subr.bf16.mxu1 %v1300_v9  ;;  %v142_v55 = vsel %vm1527_vm2, %v137_v53, %v141_v43  ;;  %1161 = vmatprep.mubr.bf16.mxu0 %v1022_v52  ;;  %v539_v14 = vshrl.u32 %v384_v7, 16  ;;  %v542_v18 = vshll.u32 %v384_v7, 16  ;;  %v579_v47 = vshll.u32 %v1574_v31, 16  ;;  %v1321_v50 = vld [vmem:[#allocation5 + $0x88] sm:$0xff]  }
  0x45   :  { %v152_v57 = vsel %vm1527_vm2, %v147_v54, %v151_v48  ;;  %v558_v29 = vrot.slane %v556_v20, 6  ;;  %v1320_v48 = vld [vmem:[#allocation5 + $0xd0] sm:$0xff]   ;;  %v402_v36 = vrot.slane %v1513_v22, 5  ;;  %v572_v52 = vor.u32 %v571_v38, %v570_v41  ;;  %v905_v38 = vld [vmem:[#allocation8 + $0x58] sm:$0xff] }
  0x46   :  { %1154 = vmatpush3.bf16.msra.mxu0 %v1299_v8  ;;  %v1023_v59 = vcombine.low %v142_v55, %v152_v57  ;;  %v1042_v8 = vrot.slane %v384_v7, 9  ;;  %v541_v24 = vrot.slane %v539_v14, 5  ;;  %v544_v26 = vrot.slane %v542_v18, 6  ;;  %v1322_v55 = vld [vmem:[#allocation5 + $0xc8] sm:$0xff]   ;;  %v710_v57 = vld [vmem:[#allocation2] sm:$0xc] }
  0x47   :  { %1174 = vmatpush3.bf16.msra.mxu1 %v1300_v9  ;;  %1155 = vmatprep.subr.bf16.mxu0 %v1301_v10  ;;  %v399_v9 = vsel %vm1553_vm6, %v397_v2, %v398_v62  ;;  %v581_v54 = vrot.slane %v579_v47, 6  ;;  %v1064_v2 = vrot.slane %v710_v57, 10  ;;  %v1325_v7 = vld [vmem:[#allocation5 + $0x138] sm:$0xff]   ;;  %v1326_v14 = vld [vmem:[#allocation5 + $0x130] sm:$0xff]   ;;  %v728_v20 = vrot.slane %v1513_v22, 6  ;;  %v909_v22 = vld [vmem:[#allocation8 + $0x78] sm:$0xff] }
  0x48   :  { %1175 = vmatprep.subr.bf16.mxu1 %v1302_v11  ;;  %v396_v17 = vsel %vm1553_vm6, %v1042_v8, %v395_v60  ;;  %v545_v33 = vor.u32 %v544_v26, %v541_v24  ;;  %v404_v60 = vrot.slane %v402_v36, 4  ;;  %v1329_v18 = vld [vmem:[#allocation5 + $0x118] sm:$0xff]   ;;  %v711_v24 = vld [vmem:[#allocation2 + $0x10] sm:$0xc]  ;;  %vm1454_vm12 = vmmov 0  }
  0x49   :  { %v1044_v21 = vcombine.low %v396_v17, %v399_v9  ;;  %v1328_v17 = vld [vmem:[#allocation5 + $0x120] sm:$0xff]   ;;  %v730_v26 = vrot.slane %v728_v20, 4  ;;  %v902_v41 = vld [vmem:[#allocation8 + $0x40] sm:$0xff]  ;;  %v895_v47 = vld [vmem:[#allocation8 + $0x8] sm:$0xff]  ;;  %vm919_vm13 = vcmask 1041409  }
  0x4a   :  { %1156 = vmatpush3.bf16.msra.mxu0 %v1301_v10  ;;  %v1559_v10 = vld [vmem:[#allocation2 + $0x10] sm:$0xe]  ;;  %v546_v43 = vrot.slane %v545_v33, 4  ;;  %v1453_v33 = vmov 0.0  }
  0x4b   :  { %1176 = vmatpush3.bf16.msra.mxu1 %v1302_v11  ;;  %1157 = vmatprep.subr.bf16.mxu0 %v1303_v28  ;;  %v549_v11 = vor.u32 %v548_v0, %v547_v3  ;;  %v562_v25 = vshrl.u32 %v1559_v10, 16  ;;  %v565_v37 = vshll.u32 %v1559_v10, 16 }
  0x4c   :  { %1177 = vmatprep.subr.bf16.mxu1 %v1304_v32 }
  0x4d   :  { %v551_v27 = vrot.slane %v549_v11, 4  ;;  %v564_v40 = vrot.slane %v562_v25, 5  ;;  %v567_v35 = vrot.slane %v565_v37, 6  ;;  %v1065_v25 = vrot.slane %v711_v24, 10  ;;  %v906_v37 = vld [vmem:[#allocation8 + $0x60] sm:$0xff] }
  0x4e   :  { %1158 = vmatpush3.bf16.msra.mxu0 %v1303_v28  ;;  %v555_v28 = vrot.slane %v553_v19, 5  ;;  %v1330_v19 = vld [vmem:[#allocation5 + $0x110] sm:$0xff]  }
  0x4f   :  { %1178 = vmatpush3.bf16.msra.mxu1 %v1304_v32  ;;  %1159 = vmatprep.subr.bf16.mxu0 %v1305_v45  ;;  %v1317_v32 = vld [vmem:[#allocation5 + $0x98] sm:$0xff]   ;;  %v568_v51 = vor.u32 %v567_v35, %v564_v40  ;;  %v896_v35 = vld [vmem:[#allocation8 + $0x10] sm:$0xff] }
  0x50   :  { %1179 = vmatprep.subr.bf16.mxu1 %v1306_v46  ;;  %v559_v34 = vor.u32 %v558_v29, %v555_v28  ;;  %v1332_v28 = vld [vmem:[#allocation5 + $0x100] sm:$0xff]   ;;  %v729_v29 = vsel %vm1593_vm11, %v1065_v25, %v728_v20  ;;  %v903_v40 = vld [vmem:[#allocation8 + $0x48] sm:$0xff] }
  0x51   :  { %v569_v62 = vrot.slane %v568_v51, 4 }
  0x52   :  { %1160 = vmatpush3.bf16.msra.mxu0 %v1305_v45  ;;  %v560_v44 = vsel %vm1570_vm8, %v551_v27, %v559_v34  ;;  %v576_v45 = vshrl.u32 %v1574_v31, 16  ;;  %v731_v27 = vrot.slane %v1574_v31, 6  ;;  %v908_v34 = vld [vmem:[#allocation8 + $0x70] sm:$0xff]  ;;  %v907_v31 = vld [vmem:[#allocation8 + $0x68] sm:$0xff] }
  0x53   :  { %1180 = vmatpush3.bf16.msra.mxu1 %v1306_v46  ;;  %1185 = vmatprep.subr.bf16.mxu0 %v1309_v56  ;;  %v550_v46 = vsel %vm1570_vm8, %v546_v43, %v549_v11  ;;  %v573_v8 = vsel %vm1570_vm8, %v569_v62, %v572_v52  ;;  %v900_v43 = vld [vmem:[#allocation8 + $0x30] sm:$0xff] }
  0x54   :  { %1205 = vmatprep.subr.bf16.mxu1 %v1310_v58  ;;  %v1054_v49 = vcombine.low %v550_v46, %v560_v44  ;;  %v578_v53 = vrot.slane %v576_v45, 5  ;;  %v732_v30 = vsel %vm1593_vm11, %v730_v26, %v731_v27  ;;  %v899_v44 = vld [vmem:[#allocation8 + $0x28] sm:$0xff]  ;;  %v898_v45 = vld [vmem:[#allocation8 + $0x20] sm:$0xff]  ;;  %v897_v46 = vld [vmem:[#allocation8 + $0x18] sm:$0xff] }
  0x55   :  { %1162 = vmatmul.mubr.bf16.vlgmr.msra.gmra.mxu0 %v1023_v59  ;;  %v1043_v59 = vrot.slane %v1559_v10, 9  ;;  %v874_v26 = vld [vmem:[#allocation7] sm:$0xff]  ;;  %v875_v27 = vld [vmem:[#allocation7 + $0x8] sm:$0xff] }
  0x56   :  { %1182 = vmatmul.mubr.bf16.vlgmr.msra.gmra.mxu1 %v1033_v61  ;;  %1186 = vmatpush3.bf16.msra.mxu0 %v1309_v56  ;;  %v721_v56 = vrot.slane %v1503_v13, 6  ;;  %v1323_v61 = vld [vmem:[#allocation5 + $0x80] sm:$0xff]   ;;  %v582_v0 = vor.u32 %v581_v54, %v578_v53  ;;  %v724_v13 = vrot.slane %v1561_v12, 6 }
  0x57   :  { %1206 = vmatpush3.bf16.msra.mxu1 %v1310_v58  ;;  %1187 = vmatprep.subr.bf16.mxu0 %v1311_v63  ;;  %v405_v58 = vrot.slane %v1515_v23, 5 }
  0x58   :  { %1207 = vmatprep.subr.bf16.mxu1 %v1312_v1  ;;  %1201 = vmatprep.mubr.bf16.mxu0 %v1044_v21  ;;  %v723_v3 = vrot.slane %v721_v56, 4  ;;  %v722_v10 = vsel %vm1593_vm11, %v1064_v2, %v721_v56  ;;  %v1331_v21 = vld [vmem:[#allocation5 + $0x108] sm:$0xff]  }
  0x59   :  { %1221 = vmatprep.mubr.bf16.mxu1 %v1054_v49 }
  0x5a   :  { %1188 = vmatpush3.bf16.msra.mxu0 %v1311_v63  ;;  %v574_v63 = vrot.slane %v572_v52, 4  ;;  %v725_v11 = vsel %vm1593_vm11, %v723_v3, %v724_v13 }
  0x5b   :  { %1208 = vmatpush3.bf16.msra.mxu1 %v1312_v1  ;;  %1189 = vmatprep.subr.bf16.mxu0 %v1313_v5  ;;  %v1324_v1 = vld [vmem:[#allocation5 + $0xc0] sm:$0xff]  }
  0x5c   :  { %1209 = vmatprep.subr.bf16.mxu1 %v1314_v6  ;;  %v583_v9 = vsel %vm1570_vm8, %v574_v63, %v582_v0 }
  0x5d   :  { %v1055_v4 = vcombine.low %v573_v8, %v583_v9 }
  0x5e   :  { %1190 = vmatpush3.bf16.msra.mxu0 %v1313_v5  ;;  %v403_v5 = vsel %vm1553_vm6, %v1043_v59, %v402_v36 }
  0x5f   :  { %1210 = vmatpush3.bf16.msra.mxu1 %v1314_v6  ;;  %1191 = vmatprep.subr.bf16.mxu0 %v1315_v15  ;;  %v406_v6 = vsel %vm1553_vm6, %v404_v60, %v405_v58 }
  0x60   :  { %1211 = vmatprep.subr.bf16.mxu1 %v1316_v16  ;;  %v1045_v12 = vcombine.low %v403_v5, %v406_v6 }
  0x62   :  { %1192 = vmatpush3.bf16.msra.mxu0 %v1315_v15  ;;  %v1066_v15 = vcombine.low %v722_v10, %v725_v11 }
  0x63   :  { %1212 = vmatpush3.bf16.msra.mxu1 %v1316_v16  ;;  %1193 = vmatprep.subr.bf16.mxu0 %v1317_v32  ;;  %v1327_v16 = vld [vmem:[#allocation5 + $0x128] sm:$0xff]  }
  0x64   :  { %1213 = vmatprep.subr.bf16.mxu1 %v1318_v39 }
  0x66   :  { %1194 = vmatpush3.bf16.msra.mxu0 %v1317_v32  ;;  %v1067_v32 = vcombine.low %v729_v29, %v732_v30 }
  0x67   :  { %1214 = vmatpush3.bf16.msra.mxu1 %v1318_v39  ;;  %1195 = vmatprep.subr.bf16.mxu0 %v1319_v42  ;;  %v904_v39 = vld [vmem:[#allocation8 + $0x50] sm:$0xff] }
  0x68   :  { %1215 = vmatprep.subr.bf16.mxu1 %v1320_v48 }
  0x6a   :  { %1196 = vmatpush3.bf16.msra.mxu0 %v1319_v42  ;;  %v901_v42 = vld [vmem:[#allocation8 + $0x38] sm:$0xff] }
  0x6b   :  { %1216 = vmatpush3.bf16.msra.mxu1 %v1320_v48  ;;  %1197 = vmatprep.subr.bf16.mxu0 %v1321_v50  ;;  %v894_v48 = vld [vmem:[#allocation8] sm:$0xff] }
  0x6c   :  { %1217 = vmatprep.subr.bf16.mxu1 %v1322_v55 }
  0x6e   :  { %1198 = vmatpush3.bf16.msra.mxu0 %v1321_v50 }
  0x6f   :  { %1218 = vmatpush3.bf16.msra.mxu1 %v1322_v55  ;;  %1199 = vmatprep.subr.bf16.mxu0 %v1323_v61 }
  0x70   :  { %1219 = vmatprep.subr.bf16.mxu1 %v1324_v1 }
  0x72   :  { %1200 = vmatpush3.bf16.msra.mxu0 %v1323_v61 }
  0x73   :  { %1220 = vmatpush3.bf16.msra.mxu1 %v1324_v1  ;;  %1225 = vmatprep.subr.bf16.mxu0 %v1325_v7 }
  0x74   :  { %1245 = vmatprep.subr.mxu1 %v1453_v33 }
  0x75   :  { %1202 = vmatmul.mubr.bf16.vlgmr.msra.gmra.mxu0 %v1045_v12 }
  0x76   :  { %1226 = vmatpush3.bf16.msra.mxu0 %v1325_v7  ;;  %1222 = vmatmul.mubr.bf16.vlgmr.msra.gmra.mxu1 %v1055_v4  ;;  %v1076_v7 = vld [vmem:[%s1628_s2] ss:$0 sm:$0xff] }
  0x77   :  { %1227 = vmatprep.subr.bf16.mxu0 %v1326_v14  ;;  %1241 = vmatprep.mubr.bf16.mxu0 %v1066_v15 }
  0x78   :  { %1246 = vmatpush3.msra.mxu1 %v909_v22  ;;  %1277 = vmatprep.mubr.msk.f32.mxu1 %vm1454_vm12, %v1453_v33 }
  0x79   :  { %1247 = vmatprep.subr.mxu1 %v1453_v33 }
  0x7a   :  { %1228 = vmatpush3.bf16.msra.mxu0 %v1326_v14  ;;  %1248 = vmatpush3.msra.mxu1 %v908_v34 }
  0x7b   :  { %1229 = vmatprep.subr.bf16.mxu0 %v1327_v16  ;;  %1249 = vmatprep.subr.mxu1 %v1453_v33 }
  0x7c   :  { %1250 = vmatpush3.msra.mxu1 %v907_v31 }
  0x7d   :  { %1251 = vmatprep.subr.mxu1 %v1453_v33 }
  0x7e   :  { %1230 = vmatpush3.bf16.msra.mxu0 %v1327_v16  ;;  %1252 = vmatpush3.msra.mxu1 %v906_v37 }
  0x7f   :  { %1231 = vmatprep.subr.bf16.mxu0 %v1328_v17  ;;  %1253 = vmatprep.subr.mxu1 %v1453_v33 }
  0x80   :  { %1254 = vmatpush3.msra.mxu1 %v905_v38 }
  0x81   :  { %1255 = vmatprep.subr.mxu1 %v1453_v33 }
  0x82   :  { %1232 = vmatpush3.bf16.msra.mxu0 %v1328_v17  ;;  %1256 = vmatpush3.msra.mxu1 %v904_v39 }
  0x83   :  { %1233 = vmatprep.subr.bf16.mxu0 %v1329_v18  ;;  %1257 = vmatprep.subr.mxu1 %v1453_v33 }
  0x84   :  { %1258 = vmatpush3.msra.mxu1 %v903_v40 }
  0x85   :  { %1259 = vmatprep.subr.mxu1 %v1453_v33 }
  0x86   :  { %1234 = vmatpush3.bf16.msra.mxu0 %v1329_v18  ;;  %1260 = vmatpush3.msra.mxu1 %v902_v41 }
  0x87   :  { %1235 = vmatprep.subr.bf16.mxu0 %v1330_v19  ;;  %1261 = vmatprep.subr.mxu1 %v1453_v33 }
  0x88   :  { %1262 = vmatpush3.msra.mxu1 %v901_v42 }
  0x89   :  { %1263 = vmatprep.subr.mxu1 %v1453_v33 }
  0x8a   :  { %1236 = vmatpush3.bf16.msra.mxu0 %v1330_v19  ;;  %1264 = vmatpush3.msra.mxu1 %v900_v43 }
  0x8b   :  { %1237 = vmatprep.subr.bf16.mxu0 %v1331_v21  ;;  %1265 = vmatprep.subr.mxu1 %v1453_v33 }
  0x8c   :  { %1266 = vmatpush3.msra.mxu1 %v899_v44 }
  0x8d   :  { %1267 = vmatprep.subr.mxu1 %v1453_v33 }
  0x8e   :  { %1238 = vmatpush3.bf16.msra.mxu0 %v1331_v21  ;;  %1268 = vmatpush3.msra.mxu1 %v898_v45 }
  0x8f   :  { %1239 = vmatprep.subr.bf16.mxu0 %v1332_v28  ;;  %1269 = vmatprep.subr.mxu1 %v1453_v33 }
  0x90   :  { %1270 = vmatpush3.msra.mxu1 %v897_v46 }
  0x91   :  { %1271 = vmatprep.subr.mxu1 %v1453_v33 }
  0x92   :  { %1240 = vmatpush3.bf16.msra.mxu0 %v1332_v28  ;;  %1272 = vmatpush3.msra.mxu1 %v896_v35 }
  0x93   :  { %1273 = vmatprep.subr.mxu1 %v1453_v33 }
  0x94   :  { %1274 = vmatpush3.msra.mxu1 %v895_v47 }
  0x95   :  { %1242 = vmatmul.mubr.bf16.vlgmr.msra.gmra.mxu0 %v1067_v32  ;;  %1275 = vmatprep.subr.mxu1 %v1453_v33 }
  0x96   :  { %1276 = vmatpush3.msra.mxu1 %v894_v48 }
 0x115   :  { %v1163_v49 = vpop.f32.mrf.mxu0 }
 0x116   :  { %v1183_v36 = vpop.f32.mrf.mxu1 }
 0x117   :  { %v260_v50 = vpop.f32.mrf.mxu0  ;;  %v378_v59 = vadd.f32 %v1183_v36, %v1163_v49 }
 0x118   :  { %v369_v51 = vpop.f32.mrf.mxu1 }
 0x119   :  { %v1164_v52 = vpop.f32.mrf.mxu0  ;;  %v370_v62 = vadd.f32 %v369_v51, %v260_v50  ;;  %v1077_v50 = vld [vmem:[%s1631_s5] ss:$0 sm:$0xff]  ;;  %s1417_s5 = scalar_lea.vmem %s1012_s21, 32 }
 0x11a   :  { %v1184_v53 = vpop.f32.mrf.mxu1  ;;  %p1418_p6 = scmp.ne.s32.totalorder %s1012_s21, %s1417_s5  ;;  %p1423_p8 = scmp.lt.s32.totalorder %s1417_s5, %s1417_s5 }
 0x11b   :  { %v263_v54 = vpop.f32.mrf.mxu0  ;;  %v381_v0 = vadd.f32 %v1184_v53, %v1164_v52 }
 0x11c   :  { %v372_v56 = vpop.f32.mrf.mxu1  ;;  %p1424_p9 = por %p1423_p8, %p1422_p7 }
 0x11d   :  { %v373_v13 = vadd.f32 %v372_v56, %v263_v54 }
 0x11e   :  { %p1425_p10 = pnand %p1424_p9, %p1418_p6 }
 0x135   :  { %v1203_v55 = vpop.f32.mrf.mxu0 }
 0x136   :  { %v1223_v58 = vpop.f32.mrf.mxu1  ;;  %v531_v63 = vadd.f32 %v1203_v55, %v378_v59 }
 0x137   :  { %v514_v57 = vpop.f32.mrf.mxu0 }
 0x138   :  { %v691_v61 = vpop.f32.mrf.mxu1  ;;  %v529_v1 = vadd.f32 %v514_v57, %v370_v62  ;;  %v708_v23 = vadd.f32 %v1223_v58, %v531_v63 }
 0x139   :  { %v1204_v60 = vpop.f32.mrf.mxu0 }
 0x13a   :  { %v1224_v3 = vpop.f32.mrf.mxu1  ;;  %v532_v5 = vadd.f32 %v1204_v60, %v381_v0  ;;  %v706_v8 = vadd.f32 %v691_v61, %v529_v1 }
 0x13b   :  { %v517_v2 = vpop.f32.mrf.mxu0 }
 0x13c   :  { %v530_v9 = vadd.f32 %v517_v2, %v373_v13  ;;  %v694_v11 = vpop.f32.mrf.mxu1  ;;  %v709_v4 = vadd.f32 %v1224_v3, %v532_v5 }
 0x13e   :  { %v707_v17 = vadd.f32 %v694_v11, %v530_v9 }
 0x155   :  { %v1243_v6 = vpop.f32.mrf.mxu0 }
 0x156   :  { %v857_v10 = vadd.f32 %v1243_v6, %v708_v23 }
 0x157   :  { %v840_v12 = vpop.f32.mrf.mxu0 }
 0x158   :  { %v868_v14 = vadd.f32 %v1076_v7, %v857_v10  ;;  %v855_v15 = vadd.f32 %v840_v12, %v706_v8 }
 0x159   :  { %v1244_v16 = vpop.f32.mrf.mxu0 }
 0x15a   :  { %v866_v18 = vadd.f32 %v1076_v7, %v855_v15  ;;  %v858_v19 = vadd.f32 %v1244_v16, %v709_v4  ;;  %v872_v21 = vmax.f32 %v868_v14, 0.0 }
 0x15b   :  { %v843_v20 = vpop.f32.mrf.mxu0 }
 0x15c   :  { %v869_v24 = vadd.f32 %v1076_v7, %v858_v19  ;;  %v856_v25 = vadd.f32 %v843_v20, %v707_v17  ;;  %v870_v28 = vmax.f32 %v866_v18, 0.0  ;;  %v878_v32 = vmul.f32 %v874_v26, %v872_v21 }
 0x15e   :  { %v873_v29 = vmax.f32 %v869_v24, 0.0  ;;  %v867_v30 = vadd.f32 %v1076_v7, %v856_v25  ;;  %v876_v34 = vmul.f32 %v874_v26, %v870_v28 }
 0x160   :  { %v879_v22 = vmul.f32 %v875_v27, %v873_v29  ;;  %v871_v33 = vmax.f32 %v867_v30, 0.0 }
 0x162   :  { %v887_v31 = vmax.f32 %v878_v32, %v879_v22  ;;  %v877_v37 = vmul.f32 %v875_v27, %v871_v33 }
 0x164   :  { %v888_v38 = vrot.slane %v887_v31, 4  ;;  %v880_v39 = vmax.f32 %v876_v34, %v877_v37 }
 0x166   :  { %v889_v40 = vmax.f32 %v887_v31, %v888_v38  ;;  %v881_v41 = vrot.slane %v880_v39, 4 }
 0x168   :  { %v890_v42 = vrot.slane %v889_v40, 2  ;;  %v882_v43 = vmax.f32 %v880_v39, %v881_v41 }
 0x16a   :  { %v883_v44 = vrot.slane %v882_v43, 2  ;;  %v891_v45 = vmax.f32 %v889_v40, %v890_v42 }
 0x16c   :  { %v884_v46 = vmax.f32 %v882_v43, %v883_v44  ;;  %v892_v35 = vrot.slane %v891_v45, 1 }
 0x16e   :  { %v885_v47 = vrot.slane %v884_v46, 1  ;;  %v893_v49 = vmax.f32 %v891_v45, %v892_v35 }
 0x170   :  { %v886_v48 = vmax.f32 %v884_v46, %v885_v47 }
 0x172   :  { %v920_v36 = vsel %vm919_vm13, %v893_v49, %v886_v48 }
 0x173   :  { %1278 = vmatmul.mubr.f32.vlgmr.msra.gmra.mxu1 %v920_v36 }
 0x233   :  { %v988_v51 = vpop.f32.mrf.mxu1 }
 0x234   :  { %v989_v52 = vadd.f32 %v1077_v50, %v988_v51 }
 0x235   :  { %v1279_v53 = vpop.f32.mrf.mxu1 }
 0x236   :  { %v993_v54 = vsel %vm716_vm9, %v989_v52, -inf }
 0x237   :  { %994 = vmax.xlane.f32.xlu0 %v993_v54 }
 0x2c0   :  { %v995_v55 = vpop.xlane.xlu0 %994 }
 0x2c1   :  { %v996_v56 = vsub.f32 %v989_v52, %v995_v55 }
 0x2c3   :  { %v997_v57 = vmul.f32 1.442695, %v996_v56 }
 0x2c5   :  { %1333 = vpow2.f32 %v997_v57 }
 0x2d2   :  { %v1334_v58 = vpop.eup %1333 }
 0x2d3   :  { %v999_v59 = vsel %vm716_vm9, %v1334_v58, 0.0 }
 0x2d4   :  { %1000 = vadd.xlane.f32.xlu0 %v999_v59 }
 0x35d   :  { %v1001_v60 = vpop.xlane.xlu0 %1000 }
 0x35e   :  { %1335 = vrcp.f32 %v1001_v60 }
 0x36b   :  { %v1336_v61 = vpop.eup %1335 }
 0x36c   :  { %v1003_v62 = vmul.f32 %v1336_v61, %v1334_v58 }
 0x36e   :  { %1004 = vst [vmem:[#allocation10] sm:$0x3] %v1003_v62 }
 0x36f   :  { %1428 = shalt.err (!%p1425_p10)
}
 0x370   :  { %1014 = dma.vmem_to_hbm [thread:$0]  %s1012_s21, 32, %s1632_s6, [#allocation4]  }
 0x371   :  { %1443 = dma.done.wait [#allocation4], 32  }
 0x372   :  { %1444 = vsyncadd [#allocation4], 4294967264 }
 0x373   :  { %1018 = vsyncpa [#allocation3], 1 }
 0x374   :  { %1019 = vsyncpa [#allocation6], 1 }
 0x375   :  { %1020 = vsyncpa [#allocation9], 1 }
 0x376   :  { %1021 = vsyncpa [#allocation4], 1 }

</bundles_post_ra>
